<compile_context>
chip_gen: v5e
topology: v5e:2x2
jax: 0.10.0
libtpu: 0.0.40
codegen_flags: <defaults>
</compile_context>

<pallas_src>
import math
import jax
import jax.numpy as jnp
from jax import lax
from jax.experimental import pallas as pl
from jax.experimental.pallas import tpu as pltpu


def make_attention_kernel(Bblk, N, M, C, num_heads, head_dim):
    bf16 = jnp.bfloat16
    f32 = jnp.float32

    def kernel(q_ref, k_ref, v_ref, w_ref, out_ref):
        # Flatten batch into rows (leading-dim merge only; no relayout) and cast
        # the MXU operands to bf16.
        q2 = q_ref[...].reshape(Bblk * N, C).astype(bf16)
        k2 = k_ref[...].reshape(Bblk * M, C).astype(bf16)
        v2 = v_ref[...].reshape(Bblk * M, C).astype(bf16)

        # Merged weight slab (bf16): rows [0,C)=Wq*scale, [C,2C)=Wk, [2C,3C)=Wv,
        # [3C,4C)=Wo, row 4C = proj bias.  All sublane slices at aligned offsets.
        wq = w_ref[0:C, :]
        wk = w_ref[C:2 * C, :]
        wv = w_ref[2 * C:3 * C, :]
        wo = w_ref[3 * C:4 * C, :]                                   # (C, C) bf16
        bias = w_ref[4 * C:4 * C + 1, :].astype(f32)                 # (1, C) f32

        # Full-width projections: one (rows, C) @ (C, C) matmul per projection
        # instead of num_heads narrow ones.  Softmax scale pre-folded into Wq.
        qp = jnp.dot(q2, wq, preferred_element_type=f32)             # (Bblk*N, C)
        kp = jnp.dot(k2, wk, preferred_element_type=f32)             # (Bblk*M, C)
        vp = jnp.dot(v2, wv, preferred_element_type=f32)             # (Bblk*M, C)

        # bf16 copies as operands for the attention matmuls; softmax stays f32.
        qpb = qp.astype(bf16)
        kpb = kp.astype(bf16)
        vpb = vp.astype(bf16)

        rows = []
        for b in range(Bblk):                       # b-outer / h-inner
            y = None                                # one live (N, C) accumulator
            for h in range(num_heads):              # static unroll, H small
                hs = h * head_dim
                qh = qpb[b * N:(b + 1) * N, hs:hs + head_dim]        # (N, hd)
                kh = kpb[b * M:(b + 1) * M, hs:hs + head_dim]        # (M, hd)
                vh = vpb[b * M:(b + 1) * M, hs:hs + head_dim]        # (M, hd)
                wo_h = wo[hs:hs + head_dim, :]                       # (hd, C)

                # Scores = qh @ kh^T: contract last dims, no explicit transpose.
                s = lax.dot_general(qh, kh, (((1,), (1,)), ((), ())),
                                    preferred_element_type=f32)      # (N, M) f32

                # Numerically stable softmax over keys, f32 throughout (v5e-safe).
                s = s - jnp.max(s, axis=-1, keepdims=True)
                p = jnp.exp(s)
                p = p / jnp.sum(p, axis=-1, keepdims=True)           # exact recip

                o = jnp.dot(p.astype(bf16), vh,
                            preferred_element_type=f32)              # (N, hd)

                # Head-concat + Wo matmul == sum over heads of per-head partials.
                contrib = jnp.dot(o.astype(bf16), wo_h,
                                  preferred_element_type=f32)        # (N, C)
                y = contrib if y is None else y + contrib
            rows.append(y + bias)

        # Single contiguous slab store for the whole block.
        slab = rows[0] if Bblk == 1 else jnp.concatenate(rows, axis=0)  # (Bblk*N, C)
        out_ref[...] = slab.astype(out_ref.dtype)

    return kernel


def attention_pallas(q, k, v, wq_t, wk_t, wv_t, wo_t, bo, *, num_heads,
                     grid_over_batch=None):
    """q: (B,N,C), k/v: (B,M,C). Weights pre-transposed to (C_in, C_out); bo: (1, C)."""
    B, N, C = q.shape
    _, M, _ = k.shape
    assert C % num_heads == 0, "num_heads must divide dim"
    hd = C // num_heads
    scale = hd ** (-0.5)

    # Merge the 5 parameter arrays into ONE (4C+1, C) bf16 slab (single DMA).
    # Folding the softmax scale into Wq scales C*C weights once (not N*M scores).
    w_all = jnp.concatenate([wq_t * scale, wk_t, wv_t, wo_t, bo],
                            axis=0).astype(jnp.bfloat16)              # (4C+1, C)

    # v7x has 2 TensorCores: grid over batch only when per-batch work dwarfs the
    # ~0.35us/step overhead; at toy sizes a single fused step wins.
    if grid_over_batch is None:
        grid_over_batch = (B > 1) and (N * M * C >= (1 << 18))
    grid_b = B if grid_over_batch else 1
    Bblk = B // grid_b

    kernel = make_attention_kernel(Bblk, N, M, C, num_heads, hd)

    out_flat = pl.pallas_call(
        kernel,
        out_shape=jax.ShapeDtypeStruct((B * N, C), jnp.float32),
        grid_spec=pltpu.PrefetchScalarGridSpec(
            num_scalar_prefetch=0,
            grid=(grid_b,),
            in_specs=[
                pl.BlockSpec((Bblk, N, C), lambda i: (i, 0, 0)),       # q
                pl.BlockSpec((Bblk, M, C), lambda i: (i, 0, 0)),       # k
                pl.BlockSpec((Bblk, M, C), lambda i: (i, 0, 0)),       # v
                pl.BlockSpec((4 * C + 1, C), lambda i: (0, 0)),        # merged weights + bias
            ],
            out_specs=pl.BlockSpec((Bblk * N, C), lambda i: (i, 0)),   # flat, contiguous slab
        ),
        compiler_params=pltpu.CompilerParams(
            dimension_semantics=("parallel",),
        ),
    )(q, k, v, w_all)

    return out_flat.reshape(B, N, C)


def attention_reference(q, k, v, wq_t, wk_t, wv_t, wo_t, bo, *, num_heads):
    """Pure-JAX f32 reference mirroring the PyTorch forward."""
    B, N, C = q.shape
    _, M, _ = k.shape
    hd = C // num_heads
    scale = hd ** (-0.5)

    qp = (q @ wq_t).reshape(B, N, num_heads, hd)
    kp = (k @ wk_t).reshape(B, M, num_heads, hd)
    vp = (v @ wv_t).reshape(B, M, num_heads, hd)

    attn = jnp.einsum("bnkc,bmkc->bknm", qp, kp) * scale
    attn = jax.nn.softmax(attn, axis=-1)
    x = jnp.einsum("bknm,bmkc->bnkc", attn, vp).reshape(B, N, C)
    return x @ wo_t + bo


if __name__ == "__main__":
    # Small shapes consistent with the module's forward.
    B, N, M, C = 2, 8, 8, 32
    num_heads = 4

    key = jax.random.PRNGKey(0)
    keys = jax.random.split(key, 8)

    q = jax.random.normal(keys[0], (B, N, C), dtype=jnp.float32)
    k = jax.random.normal(keys[1], (B, M, C), dtype=jnp.float32)
    v = jax.random.normal(keys[2], (B, M, C), dtype=jnp.float32)

    # Deterministic parameter init (stored pre-transposed: (C_in, C_out)).
    lim = 1.0 / math.sqrt(C)
    wq_t = jax.random.uniform(keys[3], (C, C), jnp.float32, -lim, lim)
    wk_t = jax.random.uniform(keys[4], (C, C), jnp.float32, -lim, lim)
    wv_t = jax.random.uniform(keys[5], (C, C), jnp.float32, -lim, lim)
    wo_t = jax.random.uniform(keys[6], (C, C), jnp.float32, -lim, lim)
    bo = jax.random.uniform(keys[7], (1, C), jnp.float32, -lim, lim)

    out = attention_pallas(q, k, v, wq_t, wk_t, wv_t, wo_t, bo, num_heads=num_heads)
    out = jax.block_until_ready(out)

    ref = attention_reference(q, k, v, wq_t, wk_t, wv_t, wo_t, bo, num_heads=num_heads)
    assert out.shape == (B, N, C)
    # Tolerance reflects bf16 MXU operands (f32 accumulation, f32 softmax);
    # the f32 reference is the ground truth.
    assert jnp.allclose(out, ref, atol=3e-2, rtol=3e-2), "mismatch vs JAX reference"

    print("KERNEL_OK")
</pallas_src>

<mosaic_0001>
module attributes {stable_mosaic.version = 11 : i64} {
  func.func @kernel(%arg0: i32, %arg1: memref<2x8x32xf32, #tpu.memory_space<vmem>>, %arg2: memref<2x8x32xf32, #tpu.memory_space<vmem>>, %arg3: memref<2x8x32xf32, #tpu.memory_space<vmem>>, %arg4: memref<129x32xbf16, #tpu.memory_space<vmem>>, %arg5: memref<16x32xf32, #tpu.memory_space<vmem>>) attributes {dimension_semantics = [#tpu.dimension_semantics<parallel>], iteration_bounds = array<i64: 1>, scalar_prefetch = 0 : i64, scratch_operands = 0 : i64, tpu.core_type = #tpu.core_type<tc>, window_params = [{transform_indices = @transform_0, window_bounds = array<i64: 2, 8, 32>}, {transform_indices = @transform_1, window_bounds = array<i64: 2, 8, 32>}, {transform_indices = @transform_2, window_bounds = array<i64: 2, 8, 32>}, {pipeline_mode = #tpu.pipeline_mode<synchronous>, transform_indices = @transform_3, window_bounds = array<i64: 129, 32>}, {transform_indices = @transform_4, window_bounds = array<i64: 16, 32>}]} {
    %c0 = arith.constant 0 : index
    %c0_0 = arith.constant 0 : index
    %c0_1 = arith.constant 0 : index
    %0 = vector.load %arg1[%c0, %c0_0, %c0_1] : memref<2x8x32xf32, #tpu.memory_space<vmem>>, vector<2x8x32xf32>
    %1 = vector.shape_cast %0 : vector<2x8x32xf32> to vector<16x32xf32>
    %2 = arith.truncf %1 : vector<16x32xf32> to vector<16x32xbf16>
    %c0_2 = arith.constant 0 : index
    %c0_3 = arith.constant 0 : index
    %c0_4 = arith.constant 0 : index
    %3 = vector.load %arg2[%c0_2, %c0_3, %c0_4] : memref<2x8x32xf32, #tpu.memory_space<vmem>>, vector<2x8x32xf32>
    %4 = vector.shape_cast %3 : vector<2x8x32xf32> to vector<16x32xf32>
    %5 = arith.truncf %4 : vector<16x32xf32> to vector<16x32xbf16>
    %c0_5 = arith.constant 0 : index
    %c0_6 = arith.constant 0 : index
    %c0_7 = arith.constant 0 : index
    %6 = vector.load %arg3[%c0_5, %c0_6, %c0_7] : memref<2x8x32xf32, #tpu.memory_space<vmem>>, vector<2x8x32xf32>
    %7 = vector.shape_cast %6 : vector<2x8x32xf32> to vector<16x32xf32>
    %8 = arith.truncf %7 : vector<16x32xf32> to vector<16x32xbf16>
    %c0_8 = arith.constant 0 : index
    %c0_9 = arith.constant 0 : index
    %9 = vector.load %arg4[%c0_8, %c0_9] : memref<129x32xbf16, #tpu.memory_space<vmem>>, vector<32x32xbf16>
    %c32 = arith.constant 32 : index
    %c0_10 = arith.constant 0 : index
    %10 = vector.load %arg4[%c32, %c0_10] : memref<129x32xbf16, #tpu.memory_space<vmem>>, vector<32x32xbf16>
    %c64 = arith.constant 64 : index
    %c0_11 = arith.constant 0 : index
    %11 = vector.load %arg4[%c64, %c0_11] : memref<129x32xbf16, #tpu.memory_space<vmem>>, vector<32x32xbf16>
    %c96 = arith.constant 96 : index
    %c0_12 = arith.constant 0 : index
    %12 = vector.load %arg4[%c96, %c0_12] : memref<129x32xbf16, #tpu.memory_space<vmem>>, vector<32x32xbf16>
    %c128 = arith.constant 128 : index
    %c0_13 = arith.constant 0 : index
    %13 = vector.load %arg4[%c128, %c0_13] : memref<129x32xbf16, #tpu.memory_space<vmem>>, vector<1x32xbf16>
    %14 = arith.extf %13 : vector<1x32xbf16> to vector<1x32xf32>
    %cst = arith.constant dense<0.000000e+00> : vector<16x32xf32>
    %15 = tpu.matmul %2, %9, %cst {dimension_numbers = #tpu.dot_dimension_numbers<[1], [0], [0], [1], [0, 0, 1, 1], [], []>} : vector<16x32xbf16>, vector<32x32xbf16>, vector<16x32xf32> -> vector<16x32xf32>
    %cst_14 = arith.constant dense<0.000000e+00> : vector<16x32xf32>
    %16 = tpu.matmul %5, %10, %cst_14 {dimension_numbers = #tpu.dot_dimension_numbers<[1], [0], [0], [1], [0, 0, 1, 1], [], []>} : vector<16x32xbf16>, vector<32x32xbf16>, vector<16x32xf32> -> vector<16x32xf32>
    %cst_15 = arith.constant dense<0.000000e+00> : vector<16x32xf32>
    %17 = tpu.matmul %8, %11, %cst_15 {dimension_numbers = #tpu.dot_dimension_numbers<[1], [0], [0], [1], [0, 0, 1, 1], [], []>} : vector<16x32xbf16>, vector<32x32xbf16>, vector<16x32xf32> -> vector<16x32xf32>
    %18 = arith.truncf %15 : vector<16x32xf32> to vector<16x32xbf16>
    %19 = arith.truncf %16 : vector<16x32xf32> to vector<16x32xbf16>
    %20 = arith.truncf %17 : vector<16x32xf32> to vector<16x32xbf16>
    %21 = vector.extract_strided_slice %18 {offsets = [0, 0], sizes = [8, 8], strides = [1, 1]} : vector<16x32xbf16> to vector<8x8xbf16>
    %22 = vector.extract_strided_slice %19 {offsets = [0, 0], sizes = [8, 8], strides = [1, 1]} : vector<16x32xbf16> to vector<8x8xbf16>
    %23 = vector.extract_strided_slice %20 {offsets = [0, 0], sizes = [8, 8], strides = [1, 1]} : vector<16x32xbf16> to vector<8x8xbf16>
    %24 = vector.extract_strided_slice %12 {offsets = [0, 0], sizes = [8, 32], strides = [1, 1]} : vector<32x32xbf16> to vector<8x32xbf16>
    %cst_16 = arith.constant dense<0.000000e+00> : vector<8x8xf32>
    %25 = tpu.matmul %21, %22, %cst_16 {dimension_numbers = #tpu.dot_dimension_numbers<[1], [1], [0], [0], [0, 0, 1, 0], [], []>} : vector<8x8xbf16>, vector<8x8xbf16>, vector<8x8xf32> -> vector<8x8xf32>
    %cst_17 = arith.constant dense<0xFF800000> : vector<8xf32>
    %26 = vector.multi_reduction <maximumf>, %25, %cst_17 [1] : vector<8x8xf32> to vector<8xf32>
    %27 = vector.shape_cast %26 : vector<8xf32> to vector<8x1xf32>
    %28 = vector.broadcast %27 : vector<8x1xf32> to vector<8x8xf32>
    %29 = arith.subf %25, %28 : vector<8x8xf32>
    %30 = math.exp %29 : vector<8x8xf32>
    %cst_18 = arith.constant dense<0.000000e+00> : vector<8xf32>
    %31 = vector.multi_reduction <add>, %30, %cst_18 [1] : vector<8x8xf32> to vector<8xf32>
    %32 = vector.shape_cast %31 : vector<8xf32> to vector<8x1xf32>
    %33 = vector.broadcast %32 : vector<8x1xf32> to vector<8x8xf32>
    %34 = arith.divf %30, %33 : vector<8x8xf32>
    %35 = arith.truncf %34 : vector<8x8xf32> to vector<8x8xbf16>
    %cst_19 = arith.constant dense<0.000000e+00> : vector<8x8xf32>
    %36 = tpu.matmul %35, %23, %cst_19 {dimension_numbers = #tpu.dot_dimension_numbers<[1], [0], [0], [1], [0, 0, 1, 1], [], []>} : vector<8x8xbf16>, vector<8x8xbf16>, vector<8x8xf32> -> vector<8x8xf32>
    %37 = arith.truncf %36 : vector<8x8xf32> to vector<8x8xbf16>
    %cst_20 = arith.constant dense<0.000000e+00> : vector<8x32xf32>
    %38 = tpu.matmul %37, %24, %cst_20 {dimension_numbers = #tpu.dot_dimension_numbers<[1], [0], [0], [1], [0, 0, 1, 1], [], []>} : vector<8x8xbf16>, vector<8x32xbf16>, vector<8x32xf32> -> vector<8x32xf32>
    %39 = vector.extract_strided_slice %18 {offsets = [0, 8], sizes = [8, 8], strides = [1, 1]} : vector<16x32xbf16> to vector<8x8xbf16>
    %40 = vector.extract_strided_slice %19 {offsets = [0, 8], sizes = [8, 8], strides = [1, 1]} : vector<16x32xbf16> to vector<8x8xbf16>
    %41 = vector.extract_strided_slice %20 {offsets = [0, 8], sizes = [8, 8], strides = [1, 1]} : vector<16x32xbf16> to vector<8x8xbf16>
    %42 = vector.extract_strided_slice %12 {offsets = [8, 0], sizes = [8, 32], strides = [1, 1]} : vector<32x32xbf16> to vector<8x32xbf16>
    %cst_21 = arith.constant dense<0.000000e+00> : vector<8x8xf32>
    %43 = tpu.matmul %39, %40, %cst_21 {dimension_numbers = #tpu.dot_dimension_numbers<[1], [1], [0], [0], [0, 0, 1, 0], [], []>} : vector<8x8xbf16>, vector<8x8xbf16>, vector<8x8xf32> -> vector<8x8xf32>
    %cst_22 = arith.constant dense<0xFF800000> : vector<8xf32>
    %44 = vector.multi_reduction <maximumf>, %43, %cst_22 [1] : vector<8x8xf32> to vector<8xf32>
    %45 = vector.shape_cast %44 : vector<8xf32> to vector<8x1xf32>
    %46 = vector.broadcast %45 : vector<8x1xf32> to vector<8x8xf32>
    %47 = arith.subf %43, %46 : vector<8x8xf32>
    %48 = math.exp %47 : vector<8x8xf32>
    %cst_23 = arith.constant dense<0.000000e+00> : vector<8xf32>
    %49 = vector.multi_reduction <add>, %48, %cst_23 [1] : vector<8x8xf32> to vector<8xf32>
    %50 = vector.shape_cast %49 : vector<8xf32> to vector<8x1xf32>
    %51 = vector.broadcast %50 : vector<8x1xf32> to vector<8x8xf32>
    %52 = arith.divf %48, %51 : vector<8x8xf32>
    %53 = arith.truncf %52 : vector<8x8xf32> to vector<8x8xbf16>
    %cst_24 = arith.constant dense<0.000000e+00> : vector<8x8xf32>
    %54 = tpu.matmul %53, %41, %cst_24 {dimension_numbers = #tpu.dot_dimension_numbers<[1], [0], [0], [1], [0, 0, 1, 1], [], []>} : vector<8x8xbf16>, vector<8x8xbf16>, vector<8x8xf32> -> vector<8x8xf32>
    %55 = arith.truncf %54 : vector<8x8xf32> to vector<8x8xbf16>
    %cst_25 = arith.constant dense<0.000000e+00> : vector<8x32xf32>
    %56 = tpu.matmul %55, %42, %cst_25 {dimension_numbers = #tpu.dot_dimension_numbers<[1], [0], [0], [1], [0, 0, 1, 1], [], []>} : vector<8x8xbf16>, vector<8x32xbf16>, vector<8x32xf32> -> vector<8x32xf32>
    %57 = arith.addf %38, %56 : vector<8x32xf32>
    %58 = vector.extract_strided_slice %18 {offsets = [0, 16], sizes = [8, 8], strides = [1, 1]} : vector<16x32xbf16> to vector<8x8xbf16>
    %59 = vector.extract_strided_slice %19 {offsets = [0, 16], sizes = [8, 8], strides = [1, 1]} : vector<16x32xbf16> to vector<8x8xbf16>
    %60 = vector.extract_strided_slice %20 {offsets = [0, 16], sizes = [8, 8], strides = [1, 1]} : vector<16x32xbf16> to vector<8x8xbf16>
    %61 = vector.extract_strided_slice %12 {offsets = [16, 0], sizes = [8, 32], strides = [1, 1]} : vector<32x32xbf16> to vector<8x32xbf16>
    %cst_26 = arith.constant dense<0.000000e+00> : vector<8x8xf32>
    %62 = tpu.matmul %58, %59, %cst_26 {dimension_numbers = #tpu.dot_dimension_numbers<[1], [1], [0], [0], [0, 0, 1, 0], [], []>} : vector<8x8xbf16>, vector<8x8xbf16>, vector<8x8xf32> -> vector<8x8xf32>
    %cst_27 = arith.constant dense<0xFF800000> : vector<8xf32>
    %63 = vector.multi_reduction <maximumf>, %62, %cst_27 [1] : vector<8x8xf32> to vector<8xf32>
    %64 = vector.shape_cast %63 : vector<8xf32> to vector<8x1xf32>
    %65 = vector.broadcast %64 : vector<8x1xf32> to vector<8x8xf32>
    %66 = arith.subf %62, %65 : vector<8x8xf32>
    %67 = math.exp %66 : vector<8x8xf32>
    %cst_28 = arith.constant dense<0.000000e+00> : vector<8xf32>
    %68 = vector.multi_reduction <add>, %67, %cst_28 [1] : vector<8x8xf32> to vector<8xf32>
    %69 = vector.shape_cast %68 : vector<8xf32> to vector<8x1xf32>
    %70 = vector.broadcast %69 : vector<8x1xf32> to vector<8x8xf32>
    %71 = arith.divf %67, %70 : vector<8x8xf32>
    %72 = arith.truncf %71 : vector<8x8xf32> to vector<8x8xbf16>
    %cst_29 = arith.constant dense<0.000000e+00> : vector<8x8xf32>
    %73 = tpu.matmul %72, %60, %cst_29 {dimension_numbers = #tpu.dot_dimension_numbers<[1], [0], [0], [1], [0, 0, 1, 1], [], []>} : vector<8x8xbf16>, vector<8x8xbf16>, vector<8x8xf32> -> vector<8x8xf32>
    %74 = arith.truncf %73 : vector<8x8xf32> to vector<8x8xbf16>
    %cst_30 = arith.constant dense<0.000000e+00> : vector<8x32xf32>
    %75 = tpu.matmul %74, %61, %cst_30 {dimension_numbers = #tpu.dot_dimension_numbers<[1], [0], [0], [1], [0, 0, 1, 1], [], []>} : vector<8x8xbf16>, vector<8x32xbf16>, vector<8x32xf32> -> vector<8x32xf32>
    %76 = arith.addf %57, %75 : vector<8x32xf32>
    %77 = vector.extract_strided_slice %18 {offsets = [0, 24], sizes = [8, 8], strides = [1, 1]} : vector<16x32xbf16> to vector<8x8xbf16>
    %78 = vector.extract_strided_slice %19 {offsets = [0, 24], sizes = [8, 8], strides = [1, 1]} : vector<16x32xbf16> to vector<8x8xbf16>
    %79 = vector.extract_strided_slice %20 {offsets = [0, 24], sizes = [8, 8], strides = [1, 1]} : vector<16x32xbf16> to vector<8x8xbf16>
    %80 = vector.extract_strided_slice %12 {offsets = [24, 0], sizes = [8, 32], strides = [1, 1]} : vector<32x32xbf16> to vector<8x32xbf16>
    %cst_31 = arith.constant dense<0.000000e+00> : vector<8x8xf32>
    %81 = tpu.matmul %77, %78, %cst_31 {dimension_numbers = #tpu.dot_dimension_numbers<[1], [1], [0], [0], [0, 0, 1, 0], [], []>} : vector<8x8xbf16>, vector<8x8xbf16>, vector<8x8xf32> -> vector<8x8xf32>
    %cst_32 = arith.constant dense<0xFF800000> : vector<8xf32>
    %82 = vector.multi_reduction <maximumf>, %81, %cst_32 [1] : vector<8x8xf32> to vector<8xf32>
    %83 = vector.shape_cast %82 : vector<8xf32> to vector<8x1xf32>
    %84 = vector.broadcast %83 : vector<8x1xf32> to vector<8x8xf32>
    %85 = arith.subf %81, %84 : vector<8x8xf32>
    %86 = math.exp %85 : vector<8x8xf32>
    %cst_33 = arith.constant dense<0.000000e+00> : vector<8xf32>
    %87 = vector.multi_reduction <add>, %86, %cst_33 [1] : vector<8x8xf32> to vector<8xf32>
    %88 = vector.shape_cast %87 : vector<8xf32> to vector<8x1xf32>
    %89 = vector.broadcast %88 : vector<8x1xf32> to vector<8x8xf32>
    %90 = arith.divf %86, %89 : vector<8x8xf32>
    %91 = arith.truncf %90 : vector<8x8xf32> to vector<8x8xbf16>
    %cst_34 = arith.constant dense<0.000000e+00> : vector<8x8xf32>
    %92 = tpu.matmul %91, %79, %cst_34 {dimension_numbers = #tpu.dot_dimension_numbers<[1], [0], [0], [1], [0, 0, 1, 1], [], []>} : vector<8x8xbf16>, vector<8x8xbf16>, vector<8x8xf32> -> vector<8x8xf32>
    %93 = arith.truncf %92 : vector<8x8xf32> to vector<8x8xbf16>
    %cst_35 = arith.constant dense<0.000000e+00> : vector<8x32xf32>
    %94 = tpu.matmul %93, %80, %cst_35 {dimension_numbers = #tpu.dot_dimension_numbers<[1], [0], [0], [1], [0, 0, 1, 1], [], []>} : vector<8x8xbf16>, vector<8x32xbf16>, vector<8x32xf32> -> vector<8x32xf32>
    %95 = arith.addf %76, %94 : vector<8x32xf32>
    %96 = vector.broadcast %14 : vector<1x32xf32> to vector<8x32xf32>
    %97 = arith.addf %95, %96 : vector<8x32xf32>
    %98 = vector.extract_strided_slice %18 {offsets = [8, 0], sizes = [8, 8], strides = [1, 1]} : vector<16x32xbf16> to vector<8x8xbf16>
    %99 = vector.extract_strided_slice %19 {offsets = [8, 0], sizes = [8, 8], strides = [1, 1]} : vector<16x32xbf16> to vector<8x8xbf16>
    %100 = vector.extract_strided_slice %20 {offsets = [8, 0], sizes = [8, 8], strides = [1, 1]} : vector<16x32xbf16> to vector<8x8xbf16>
    %101 = vector.extract_strided_slice %12 {offsets = [0, 0], sizes = [8, 32], strides = [1, 1]} : vector<32x32xbf16> to vector<8x32xbf16>
    %cst_36 = arith.constant dense<0.000000e+00> : vector<8x8xf32>
    %102 = tpu.matmul %98, %99, %cst_36 {dimension_numbers = #tpu.dot_dimension_numbers<[1], [1], [0], [0], [0, 0, 1, 0], [], []>} : vector<8x8xbf16>, vector<8x8xbf16>, vector<8x8xf32> -> vector<8x8xf32>
    %cst_37 = arith.constant dense<0xFF800000> : vector<8xf32>
    %103 = vector.multi_reduction <maximumf>, %102, %cst_37 [1] : vector<8x8xf32> to vector<8xf32>
    %104 = vector.shape_cast %103 : vector<8xf32> to vector<8x1xf32>
    %105 = vector.broadcast %104 : vector<8x1xf32> to vector<8x8xf32>
    %106 = arith.subf %102, %105 : vector<8x8xf32>
    %107 = math.exp %106 : vector<8x8xf32>
    %cst_38 = arith.constant dense<0.000000e+00> : vector<8xf32>
    %108 = vector.multi_reduction <add>, %107, %cst_38 [1] : vector<8x8xf32> to vector<8xf32>
    %109 = vector.shape_cast %108 : vector<8xf32> to vector<8x1xf32>
    %110 = vector.broadcast %109 : vector<8x1xf32> to vector<8x8xf32>
    %111 = arith.divf %107, %110 : vector<8x8xf32>
    %112 = arith.truncf %111 : vector<8x8xf32> to vector<8x8xbf16>
    %cst_39 = arith.constant dense<0.000000e+00> : vector<8x8xf32>
    %113 = tpu.matmul %112, %100, %cst_39 {dimension_numbers = #tpu.dot_dimension_numbers<[1], [0], [0], [1], [0, 0, 1, 1], [], []>} : vector<8x8xbf16>, vector<8x8xbf16>, vector<8x8xf32> -> vector<8x8xf32>
    %114 = arith.truncf %113 : vector<8x8xf32> to vector<8x8xbf16>
    %cst_40 = arith.constant dense<0.000000e+00> : vector<8x32xf32>
    %115 = tpu.matmul %114, %101, %cst_40 {dimension_numbers = #tpu.dot_dimension_numbers<[1], [0], [0], [1], [0, 0, 1, 1], [], []>} : vector<8x8xbf16>, vector<8x32xbf16>, vector<8x32xf32> -> vector<8x32xf32>
    %116 = vector.extract_strided_slice %18 {offsets = [8, 8], sizes = [8, 8], strides = [1, 1]} : vector<16x32xbf16> to vector<8x8xbf16>
    %117 = vector.extract_strided_slice %19 {offsets = [8, 8], sizes = [8, 8], strides = [1, 1]} : vector<16x32xbf16> to vector<8x8xbf16>
    %118 = vector.extract_strided_slice %20 {offsets = [8, 8], sizes = [8, 8], strides = [1, 1]} : vector<16x32xbf16> to vector<8x8xbf16>
    %119 = vector.extract_strided_slice %12 {offsets = [8, 0], sizes = [8, 32], strides = [1, 1]} : vector<32x32xbf16> to vector<8x32xbf16>
    %cst_41 = arith.constant dense<0.000000e+00> : vector<8x8xf32>
    %120 = tpu.matmul %116, %117, %cst_41 {dimension_numbers = #tpu.dot_dimension_numbers<[1], [1], [0], [0], [0, 0, 1, 0], [], []>} : vector<8x8xbf16>, vector<8x8xbf16>, vector<8x8xf32> -> vector<8x8xf32>
    %cst_42 = arith.constant dense<0xFF800000> : vector<8xf32>
    %121 = vector.multi_reduction <maximumf>, %120, %cst_42 [1] : vector<8x8xf32> to vector<8xf32>
    %122 = vector.shape_cast %121 : vector<8xf32> to vector<8x1xf32>
    %123 = vector.broadcast %122 : vector<8x1xf32> to vector<8x8xf32>
    %124 = arith.subf %120, %123 : vector<8x8xf32>
    %125 = math.exp %124 : vector<8x8xf32>
    %cst_43 = arith.constant dense<0.000000e+00> : vector<8xf32>
    %126 = vector.multi_reduction <add>, %125, %cst_43 [1] : vector<8x8xf32> to vector<8xf32>
    %127 = vector.shape_cast %126 : vector<8xf32> to vector<8x1xf32>
    %128 = vector.broadcast %127 : vector<8x1xf32> to vector<8x8xf32>
    %129 = arith.divf %125, %128 : vector<8x8xf32>
    %130 = arith.truncf %129 : vector<8x8xf32> to vector<8x8xbf16>
    %cst_44 = arith.constant dense<0.000000e+00> : vector<8x8xf32>
    %131 = tpu.matmul %130, %118, %cst_44 {dimension_numbers = #tpu.dot_dimension_numbers<[1], [0], [0], [1], [0, 0, 1, 1], [], []>} : vector<8x8xbf16>, vector<8x8xbf16>, vector<8x8xf32> -> vector<8x8xf32>
    %132 = arith.truncf %131 : vector<8x8xf32> to vector<8x8xbf16>
    %cst_45 = arith.constant dense<0.000000e+00> : vector<8x32xf32>
    %133 = tpu.matmul %132, %119, %cst_45 {dimension_numbers = #tpu.dot_dimension_numbers<[1], [0], [0], [1], [0, 0, 1, 1], [], []>} : vector<8x8xbf16>, vector<8x32xbf16>, vector<8x32xf32> -> vector<8x32xf32>
    %134 = arith.addf %115, %133 : vector<8x32xf32>
    %135 = vector.extract_strided_slice %18 {offsets = [8, 16], sizes = [8, 8], strides = [1, 1]} : vector<16x32xbf16> to vector<8x8xbf16>
    %136 = vector.extract_strided_slice %19 {offsets = [8, 16], sizes = [8, 8], strides = [1, 1]} : vector<16x32xbf16> to vector<8x8xbf16>
    %137 = vector.extract_strided_slice %20 {offsets = [8, 16], sizes = [8, 8], strides = [1, 1]} : vector<16x32xbf16> to vector<8x8xbf16>
    %138 = vector.extract_strided_slice %12 {offsets = [16, 0], sizes = [8, 32], strides = [1, 1]} : vector<32x32xbf16> to vector<8x32xbf16>
    %cst_46 = arith.constant dense<0.000000e+00> : vector<8x8xf32>
    %139 = tpu.matmul %135, %136, %cst_46 {dimension_numbers = #tpu.dot_dimension_numbers<[1], [1], [0], [0], [0, 0, 1, 0], [], []>} : vector<8x8xbf16>, vector<8x8xbf16>, vector<8x8xf32> -> vector<8x8xf32>
    %cst_47 = arith.constant dense<0xFF800000> : vector<8xf32>
    %140 = vector.multi_reduction <maximumf>, %139, %cst_47 [1] : vector<8x8xf32> to vector<8xf32>
    %141 = vector.shape_cast %140 : vector<8xf32> to vector<8x1xf32>
    %142 = vector.broadcast %141 : vector<8x1xf32> to vector<8x8xf32>
    %143 = arith.subf %139, %142 : vector<8x8xf32>
    %144 = math.exp %143 : vector<8x8xf32>
    %cst_48 = arith.constant dense<0.000000e+00> : vector<8xf32>
    %145 = vector.multi_reduction <add>, %144, %cst_48 [1] : vector<8x8xf32> to vector<8xf32>
    %146 = vector.shape_cast %145 : vector<8xf32> to vector<8x1xf32>
    %147 = vector.broadcast %146 : vector<8x1xf32> to vector<8x8xf32>
    %148 = arith.divf %144, %147 : vector<8x8xf32>
    %149 = arith.truncf %148 : vector<8x8xf32> to vector<8x8xbf16>
    %cst_49 = arith.constant dense<0.000000e+00> : vector<8x8xf32>
    %150 = tpu.matmul %149, %137, %cst_49 {dimension_numbers = #tpu.dot_dimension_numbers<[1], [0], [0], [1], [0, 0, 1, 1], [], []>} : vector<8x8xbf16>, vector<8x8xbf16>, vector<8x8xf32> -> vector<8x8xf32>
    %151 = arith.truncf %150 : vector<8x8xf32> to vector<8x8xbf16>
    %cst_50 = arith.constant dense<0.000000e+00> : vector<8x32xf32>
    %152 = tpu.matmul %151, %138, %cst_50 {dimension_numbers = #tpu.dot_dimension_numbers<[1], [0], [0], [1], [0, 0, 1, 1], [], []>} : vector<8x8xbf16>, vector<8x32xbf16>, vector<8x32xf32> -> vector<8x32xf32>
    %153 = arith.addf %134, %152 : vector<8x32xf32>
    %154 = vector.extract_strided_slice %18 {offsets = [8, 24], sizes = [8, 8], strides = [1, 1]} : vector<16x32xbf16> to vector<8x8xbf16>
    %155 = vector.extract_strided_slice %19 {offsets = [8, 24], sizes = [8, 8], strides = [1, 1]} : vector<16x32xbf16> to vector<8x8xbf16>
    %156 = vector.extract_strided_slice %20 {offsets = [8, 24], sizes = [8, 8], strides = [1, 1]} : vector<16x32xbf16> to vector<8x8xbf16>
    %157 = vector.extract_strided_slice %12 {offsets = [24, 0], sizes = [8, 32], strides = [1, 1]} : vector<32x32xbf16> to vector<8x32xbf16>
    %cst_51 = arith.constant dense<0.000000e+00> : vector<8x8xf32>
    %158 = tpu.matmul %154, %155, %cst_51 {dimension_numbers = #tpu.dot_dimension_numbers<[1], [1], [0], [0], [0, 0, 1, 0], [], []>} : vector<8x8xbf16>, vector<8x8xbf16>, vector<8x8xf32> -> vector<8x8xf32>
    %cst_52 = arith.constant dense<0xFF800000> : vector<8xf32>
    %159 = vector.multi_reduction <maximumf>, %158, %cst_52 [1] : vector<8x8xf32> to vector<8xf32>
    %160 = vector.shape_cast %159 : vector<8xf32> to vector<8x1xf32>
    %161 = vector.broadcast %160 : vector<8x1xf32> to vector<8x8xf32>
    %162 = arith.subf %158, %161 : vector<8x8xf32>
    %163 = math.exp %162 : vector<8x8xf32>
    %cst_53 = arith.constant dense<0.000000e+00> : vector<8xf32>
    %164 = vector.multi_reduction <add>, %163, %cst_53 [1] : vector<8x8xf32> to vector<8xf32>
    %165 = vector.shape_cast %164 : vector<8xf32> to vector<8x1xf32>
    %166 = vector.broadcast %165 : vector<8x1xf32> to vector<8x8xf32>
    %167 = arith.divf %163, %166 : vector<8x8xf32>
    %168 = arith.truncf %167 : vector<8x8xf32> to vector<8x8xbf16>
    %cst_54 = arith.constant dense<0.000000e+00> : vector<8x8xf32>
    %169 = tpu.matmul %168, %156, %cst_54 {dimension_numbers = #tpu.dot_dimension_numbers<[1], [0], [0], [1], [0, 0, 1, 1], [], []>} : vector<8x8xbf16>, vector<8x8xbf16>, vector<8x8xf32> -> vector<8x8xf32>
    %170 = arith.truncf %169 : vector<8x8xf32> to vector<8x8xbf16>
    %cst_55 = arith.constant dense<0.000000e+00> : vector<8x32xf32>
    %171 = tpu.matmul %170, %157, %cst_55 {dimension_numbers = #tpu.dot_dimension_numbers<[1], [0], [0], [1], [0, 0, 1, 1], [], []>} : vector<8x8xbf16>, vector<8x32xbf16>, vector<8x32xf32> -> vector<8x32xf32>
    %172 = arith.addf %153, %171 : vector<8x32xf32>
    %173 = vector.broadcast %14 : vector<1x32xf32> to vector<8x32xf32>
    %174 = arith.addf %172, %173 : vector<8x32xf32>
    %175 = tpu.concatenate %97, %174 in 0 : vector<8x32xf32>, vector<8x32xf32> -> vector<16x32xf32>
    %c0_56 = arith.constant 0 : index
    %c0_57 = arith.constant 0 : index
    %176 = vector.load %arg5[%c0_56, %c0_57] : memref<16x32xf32, #tpu.memory_space<vmem>>, vector<16x32xf32>
    tpu.vector_store %arg5[%c0_56, %c0_57], %175 {strides = array<i32>} : memref<16x32xf32, #tpu.memory_space<vmem>>, vector<16x32xf32>,
    return
  }
  func.func @transform_0(%arg0: i32) -> (i32, i32, i32) {
    %c0_i32 = arith.constant 0 : i32
    %c0_i32_0 = arith.constant 0 : i32
    %c0_i32_1 = arith.constant 0 : i32
    return %arg0, %c0_i32, %c0_i32_0 : i32, i32, i32
  }
  func.func @transform_1(%arg0: i32) -> (i32, i32, i32) {
    %c0_i32 = arith.constant 0 : i32
    %c0_i32_0 = arith.constant 0 : i32
    %c0_i32_1 = arith.constant 0 : i32
    return %arg0, %c0_i32, %c0_i32_0 : i32, i32, i32
  }
  func.func @transform_2(%arg0: i32) -> (i32, i32, i32) {
    %c0_i32 = arith.constant 0 : i32
    %c0_i32_0 = arith.constant 0 : i32
    %c0_i32_1 = arith.constant 0 : i32
    return %arg0, %c0_i32, %c0_i32_0 : i32, i32, i32
  }
  func.func @transform_3(%arg0: i32) -> (i32, i32) {
    %c0_i32 = arith.constant 0 : i32
    %c0_i32_0 = arith.constant 0 : i32
    %c0_i32_1 = arith.constant 0 : i32
    return %c0_i32, %c0_i32_0 : i32, i32
  }
  func.func @transform_4(%arg0: i32) -> (i32, i32) {
    %c0_i32 = arith.constant 0 : i32
    %c0_i32_0 = arith.constant 0 : i32
    return %arg0, %c0_i32 : i32, i32
  }
}

</mosaic_0001>

<bundles_post_ra>
// kernel: tpu_custom_call.1
= control target key start
LH: loop header
LB: loop body
LE: loop exit
PB: predicated region body
PF: predicated region fallthrough
CT: control target
= control target key end

     0   :  { %s1209_s0 = inlined_call_operand.vmem [shape: f32[2,8,32], index: 0, kind: input, shape index: {}]   ;;  %s1210_s1 = inlined_call_operand.vmem [shape: f32[2,8,32], index: 1, kind: input, shape index: {}]   ;;  %s1211_s2 = inlined_call_operand.vmem [shape: f32[2,8,32], index: 2, kind: input, shape index: {}]   ;;  %s1212_s3 = inlined_call_operand.vmem [shape: bf16[129,32], index: 3, kind: input, shape index: {}]   ;;  %s1213_s4 = inlined_call_operand.hbm [shape: f32[16,32], index: 4, kind: output, shape index: {}]  }
   0x1   :  { %v927_v0 = vld [vmem:[%s1212_s3 + $0x8] sm:$0xff]  ;;  %v929_v1 = vld [vmem:[%s1212_s3 + $0x18] sm:$0xff]  ;;  %v926_v2 = vld [vmem:[%s1212_s3] sm:$0xff] }
   0x2   :  { %v928_v3 = vld [vmem:[%s1212_s3 + $0x10] sm:$0xff]  ;;  %v19_v4 = vld [vmem:[%s1209_s0] sm:$0xff]  ;;  %v20_v5 = vld [vmem:[%s1209_s0 + $0x8] sm:$0xff]  ;;  %68 = vmatpush.bf16.msra.mxu0 %v927_v0  ;;  %97 = vmatpush.bf16.msra.mxu1 %v929_v1 }
   0x3   :  { %v22_v6 = vld [vmem:[%s1210_s1] sm:$0xff]  ;;  %v23_v7 = vld [vmem:[%s1210_s1 + $0x8] sm:$0xff] }
   0x4   :  { %9 = vsyncpa [#allocation3], 0  ;;  %v21_v8 = vpack.c.bf16 %v20_v5, %v19_v4  ;;  %v24_v9 = vpack.c.bf16 %v23_v7, %v22_v6  ;;  %vm58_vm0 = vcmask 261120   ;;  %vm140_vm1 = vcmask 64512   ;;  %s996_s0 = smov 112   ;;  %s997_s1 = smov 120  }
   0x5   :  { %v931_v19 = vld [vmem:[%s1212_s3 + $0x28] sm:$0xff]  ;;  %v930_v20 = vld [vmem:[%s1212_s3 + $0x20] sm:$0xff]  ;;  %vm188_vm2 = vcmask 1043456   ;;  %s863_s26 = sshll.u32 %s1213_s4, 4  ;;  %s1000_s27 = smov 128   ;;  %s864_s26 = int_to_ptr.hbm [resolvable:$true] %s863_s26 }
   0x6   :  { %69 = vmatpush.bf16.msra.mxu0 %v926_v2  ;;  %98 = vmatpush.bf16.msra.mxu1 %v928_v3  ;;  %v25_v21 = vld [vmem:[%s1211_s2] sm:$0xff]  ;;  %v26_v22 = vld [vmem:[%s1211_s2 + $0x8] sm:$0xff]  ;;  %s998_s2 = smov 104   ;;  %s1001_s28 = smov 8  }
   0x7   :  { %126 = vmatpush.bf16.msra.mxu2 %v931_v19  ;;  %v27_v27 = vpack.c.bf16 %v26_v22, %v25_v21 }
   0x9   :  { %883 = vmatmul.msk.bf16.vlgmr.msra.gmra.mxu0 %vm58_vm0, %v21_v8  ;;  %892 = vmatmul.msk.bf16.vlgmr.msra.gmra.mxu1 %vm58_vm0, %v24_v9 }
   0xb   :  { %127 = vmatpush.bf16.msra.mxu2 %v930_v20 }
   0xe   :  { %901 = vmatmul.msk.bf16.vlgmr.msra.gmra.mxu2 %vm58_vm0, %v27_v27 }
  0x86   :  { %v100_v10 = vpop.f32.mrf.mxu1  ;;  %v71_v12 = vpop.f32.mrf.mxu0 }
  0x87   :  { %v136_v11 = vpack.c.bf16 %v100_v10, %v100_v10  ;;  %v134_v13 = vpack.c.bf16 %v71_v12, %v71_v12 }
  0x89   :  { %v212_v14 = vunpack.c.l.b16 %v136_v11  ;;  %v145_v15 = vsel %vm140_vm1, %v136_v11, 0  ;;  %v207_v17 = vunpack.c.l.b16 %v134_v13 }
  0x8a   :  { %154 = vmatpush.bf16.xpose.msra.mxu3 %v145_v15 }
  0x8b   :  { %v1054_v16 = vpack.c.b16 %v212_v14, %v212_v14  ;;  %v1060_v18 = vpack.c.b16 %v207_v17, %v207_v17 }
  0x8d   :  { %325 = vrot.lane.b32.xlu1 %v1054_v16, %s996_s0  ;;  %214 = vrot.lane.b32.xlu0 %v1054_v16, %s997_s1 }
  0x8e   :  { %v1084_v32 = vpop.f32.mrf.mxu1 }
  0x91   :  { %902 = vmatmul.msk.bf16.vlgmr.msra.gmra.mxu3 %vm140_vm1, %v134_v13  ;;  %v129_v39 = vpop.f32.mrf.mxu2 }
  0x92   :  { %v138_v40 = vpack.c.bf16 %v129_v39, %v129_v39 }
  0x94   :  { %v261_v41 = vunpack.c.l.b16 %v138_v40  ;;  %v190_v43 = vsel %vm188_vm2, %v138_v40, 0 }
  0x95   :  { %323 = vrot.lane.b32.xlu1 %v1060_v18, %s996_s0  ;;  %209 = vrot.lane.b32.xlu0 %v1060_v18, %s997_s1 }
  0x96   :  { %v1088_v42 = vpack.c.b16 %v261_v41, %v261_v41  ;;  %199 = vmatpush.bf16.msrb.mxu0 %v190_v43 }
  0xff   :  { %v326_v23 = vpop.permute.xlu1 %325  ;;  %v215_v24 = vpop.permute.xlu0 %214 }
 0x100   :  { %v331_v25 = vsel %vm140_vm1, %v326_v23, 0  ;;  %v220_v26 = vsel %vm140_vm1, %v215_v24, 0 }
 0x101   :  { %229 = vmatpush.bf16.xpose.msrb.mxu1 %v220_v26  ;;  %v40_v26 = vld [vmem:[%s1212_s3 + $0x30] sm:$0xf] }
 0x102   :  { %v308_v27 = vsel %vm188_vm2, %v40_v26, 0 }
 0x103   :  { %317 = vmatpush.bf16.msra.mxu0 %v308_v27 }
 0x107   :  { %v210_v28 = vpop.permute.xlu0 %209  ;;  %v324_v30 = vpop.permute.xlu1 %323 }
 0x108   :  { %904 = vmatmul.msk.bf16.vlgmr.msrb.gmra.mxu1 %vm140_vm1, %v210_v28  ;;  %v41_v28 = vld [vmem:[%s1212_s3 + $0x34] sm:$0xf] }
 0x109   :  { %340 = vmatpush.bf16.xpose.msra.mxu1 %v331_v25 }
 0x114   :  { %v156_v29 = vpop.f32.mrf.mxu3 }
 0x115   :  { %v160_v44 = vsel %vm140_vm1, %v156_v29, -inf }
 0x118   :  { %908 = vmatmul.msk.bf16.vlgmr.msra.gmra.mxu1 %vm140_vm1, %v324_v30 }
 0x11c   :  { %v158_v31 = vpop.f32.mrf.mxu3 }
 0x185   :  { %v231_v33 = vpop.f32.mrf.mxu1 }
 0x186   :  { %v235_v34 = vsel %vm140_vm1, %v231_v33, -inf }
 0x187   :  { %236 = vmax.xlane.f32.xlu2 %v235_v34 }
 0x18d   :  { %v233_v35 = vpop.f32.mrf.mxu1 }
 0x195   :  { %v342_v36 = vpop.f32.mrf.mxu1 }
 0x196   :  { %v346_v37 = vsel %vm140_vm1, %v342_v36, -inf }
 0x197   :  { %347 = vmax.xlane.f32.xlu2 %v346_v37 }
 0x19d   :  { %v344_v38 = vpop.f32.mrf.mxu1 }
 0x1af   :  { %263 = vrot.lane.b32.xlu2 %v1088_v42, %s997_s1 }
 0x1b7   :  { %371 = vrot.lane.b32.xlu2 %v1088_v42, %s996_s0 }
 0x1e0   :  { %161 = vmax.xlane.f32.xlu2 %v160_v44 }
 0x1fa   :  { %v237_v45 = vpop.xlane.xlu2 %236 }
 0x1fb   :  { %v238_v46 = vsub.f32 %v231_v33, %v237_v45 }
 0x1fd   :  { %v239_v47 = vmul.f32 1.442695, %v238_v46 }
 0x1ff   :  { %938 = vpow2.f32 %v239_v47  ;;  %v42_v47 = vld [vmem:[%s1212_s3 + $0x38] sm:$0xf] }
 0x205   :  { %v939_v48 = vpop.eup %938 }
 0x206   :  { %v241_v49 = vsel %vm140_vm1, %v939_v48, 0.0 }
 0x207   :  { %242 = vadd.xlane.f32.xlu0 %v241_v49  ;;  %v131_v49 = vpop.f32.mrf.mxu2 }
 0x20a   :  { %v348_v50 = vpop.xlane.xlu2 %347 }
 0x20b   :  { %v349_v51 = vsub.f32 %v342_v36, %v348_v50  ;;  %v137_v50 = vpack.c.bf16 %v1084_v32, %v1084_v32  ;;  %v1131_v32 = vpack.c.bf16 %v131_v49, %v131_v49 }
 0x20d   :  { %v350_v52 = vmul.f32 1.442695, %v349_v51 }
 0x20f   :  { %940 = vpow2.f32 %v350_v52 }
 0x212   :  { %v264_v53 = vpop.permute.xlu2 %263 }
 0x213   :  { %v269_v54 = vsel %vm188_vm2, %v264_v53, 0  ;;  %v509_v53 = vsel %vm140_vm1, %v137_v50, 0 }
 0x214   :  { %278 = vmatpush.bf16.msrb.mxu2 %v269_v54 }
 0x215   :  { %v941_v55 = vpop.eup %940 }
 0x216   :  { %v352_v56 = vsel %vm140_vm1, %v941_v55, 0.0 }
 0x217   :  { %353 = vadd.xlane.f32.xlu1 %v352_v56 }
 0x21a   :  { %v372_v57 = vpop.permute.xlu2 %371 }
 0x21b   :  { %v377_v58 = vsel %vm188_vm2, %v372_v57, 0 }
 0x21c   :  { %386 = vmatpush.bf16.msra.mxu2 %v377_v58  ;;  %v73_v58 = vpop.f32.mrf.mxu0 }
 0x230   :  { %415 = vrot.lane.b32.xlu1 %v1054_v16, %s998_s2 }
 0x253   :  { %v162_v59 = vpop.xlane.xlu2 %161 }
 0x254   :  { %v163_v60 = vsub.f32 %v156_v29, %v162_v59  ;;  %v289_v29 = vsel %vm188_vm2, %v41_v28, 0  ;;  %v135_v59 = vpack.c.bf16 %v73_v58, %v73_v58 }
 0x255   :  { %298 = vmatpush.bf16.msrb.mxu3 %v289_v29 }
 0x256   :  { %v164_v61 = vmul.f32 1.442695, %v163_v60 }
 0x258   :  { %942 = vpow2.f32 %v164_v61 }
 0x25e   :  { %v1102_v62 = vpop.eup %942 }
 0x25f   :  { %v166_v63 = vsel %vm140_vm1, %v1102_v62, 0.0 }
 0x260   :  { %167 = vadd.xlane.f32.xlu0 %v166_v63 }
 0x274   :  { %413 = vrot.lane.b32.xlu0 %v1060_v18, %s998_s2 }
 0x27a   :  { %v243_v0 = vpop.xlane.xlu0 %242 }
 0x27b   :  { %944 = vrcp.f32 %v243_v0  ;;  %v255_v5 = vand.u32 2147483648, %v243_v0  ;;  %v253_v6 = vand.u32 2147483647, %v243_v0  ;;  %vm249_vm4 = vweird.f32 %v243_v0 }
 0x27d   :  { %v256_v8 = vor.u32 1.1754944e-38, %v255_v5  ;;  %vm254_vm6 = vcmp.eq.f32.partialorder %v253_v6, 8.507059e+37 }
 0x281   :  { %v945_v1 = vpop.eup %944 }
 0x282   :  { %v245_v2 = vmul.f32 %v945_v1, %v243_v0  ;;  %vm250_vm3 = vweird.f32 %v945_v1 }
 0x283   :  { %vm251_vm5 = vmor %vm249_vm4, %vm250_vm3 }
 0x284   :  { %v246_v3 = vsub.f32 1.0, %v245_v2 }
 0x286   :  { %v247_v4 = vmul.f32 %v945_v1, %v246_v3 }
 0x288   :  { %v248_v7 = vadd.f32 %v945_v1, %v247_v4 }
 0x28a   :  { %v354_v9 = vpop.xlane.xlu1 %353  ;;  %v252_v10 = vsel %vm251_vm5, %v945_v1, %v248_v7 }
 0x28b   :  { %946 = vrcp.f32 %v354_v9  ;;  %v257_v11 = vsel %vm254_vm6, %v256_v8, %v252_v10  ;;  %v366_v17 = vand.u32 2147483648, %v354_v9  ;;  %v364_v19 = vand.u32 2147483647, %v354_v9 }
 0x28c   :  { %v258_v12 = vmul.f32 %v939_v48, %v257_v11  ;;  %vm360_vm8 = vweird.f32 %v354_v9  ;;  %v397_v48 = vsel %vm188_vm2, %v42_v47, 0  ;;  %v575_v8 = vunpack.c.l.b16 %v137_v50 }
 0x28d   :  { %v367_v21 = vor.u32 1.1754944e-38, %v366_v17  ;;  %vm365_vm10 = vcmp.eq.f32.partialorder %v364_v19, 8.507059e+37  ;;  %406 = vmatpush.bf16.msra.mxu3 %v397_v48 }
 0x28e   :  { %v259_v13 = vpack.c.bf16 %v258_v12, %v258_v12 }
 0x290   :  { %905 = vmatmul.msk.bf16.vlgmr.msrb.gmra.mxu2 %vm140_vm1, %v259_v13 }
 0x291   :  { %v947_v14 = vpop.eup %946 }
 0x292   :  { %v356_v15 = vmul.f32 %v947_v14, %v354_v9  ;;  %vm361_vm7 = vweird.f32 %v947_v14  ;;  %v576_v9 = vpack.c.b16 %v575_v8, %v575_v8 }
 0x293   :  { %vm362_vm9 = vmor %vm360_vm8, %vm361_vm7 }
 0x294   :  { %v357_v16 = vsub.f32 1.0, %v356_v15 }
 0x296   :  { %v358_v18 = vmul.f32 %v947_v14, %v357_v16 }
 0x298   :  { %v359_v20 = vadd.f32 %v947_v14, %v358_v18 }
 0x29a   :  { %v363_v22 = vsel %vm362_vm9, %v947_v14, %v359_v20 }
 0x29b   :  { %v368_v23 = vsel %vm365_vm10, %v367_v21, %v363_v22  ;;  %v570_v22 = vunpack.c.l.b16 %v135_v59 }
 0x29c   :  { %v369_v24 = vmul.f32 %v941_v55, %v368_v23 }
 0x29d   :  { %v571_v23 = vpack.c.b16 %v570_v22, %v570_v22 }
 0x29e   :  { %v370_v25 = vpack.c.bf16 %v369_v24, %v369_v24 }
 0x2a0   :  { %909 = vmatmul.msk.bf16.vlgmr.msra.gmra.mxu2 %vm140_vm1, %v370_v25 }
 0x2a2   :  { %v416_v44 = vpop.permute.xlu1 %415 }
 0x2a3   :  { %v421_v46 = vsel %vm140_vm1, %v416_v44, 0 }
 0x2d3   :  { %v168_v30 = vpop.xlane.xlu0 %167 }
 0x2d4   :  { %948 = vrcp.f32 %v168_v30  ;;  %v180_v35 = vand.u32 2147483648, %v168_v30  ;;  %v178_v37 = vand.u32 2147483647, %v168_v30  ;;  %vm174_vm12 = vweird.f32 %v168_v30 }
 0x2d6   :  { %v181_v39 = vor.u32 1.1754944e-38, %v180_v35  ;;  %vm179_vm14 = vcmp.eq.f32.partialorder %v178_v37, 8.507059e+37 }
 0x2da   :  { %v949_v31 = vpop.eup %948 }
 0x2db   :  { %v170_v33 = vmul.f32 %v949_v31, %v168_v30  ;;  %vm175_vm11 = vweird.f32 %v949_v31 }
 0x2dc   :  { %vm176_vm13 = vmor %vm174_vm12, %vm175_vm11 }
 0x2dd   :  { %v171_v34 = vsub.f32 1.0, %v170_v33 }
 0x2df   :  { %v172_v36 = vmul.f32 %v949_v31, %v171_v34 }
 0x2e1   :  { %v173_v38 = vadd.f32 %v949_v31, %v172_v36 }
 0x2e3   :  { %v177_v40 = vsel %vm176_vm13, %v949_v31, %v173_v38 }
 0x2e4   :  { %v182_v41 = vsel %vm179_vm14, %v181_v39, %v177_v40 }
 0x2e5   :  { %v183_v43 = vmul.f32 %v1102_v62, %v182_v41  ;;  %v553_v62 = vsel %vm188_vm2, %v1131_v32, 0 }
 0x2e6   :  { %v414_v0 = vpop.permute.xlu0 %413 }
 0x2e7   :  { %v184_v45 = vpack.c.bf16 %v183_v43, %v183_v43 }
 0x2e9   :  { %903 = vmatmul.msk.bf16.vlgmr.msrb.gmra.mxu0 %vm140_vm1, %v184_v45 }
 0x2ea   :  { %430 = vmatpush.bf16.xpose.msrb.mxu0 %v421_v46 }
 0x313   :  { %v280_v51 = vpop.f32.mrf.mxu2 }
 0x314   :  { %v284_v52 = vpack.c.bf16 %v280_v51, %v280_v51 }
 0x316   :  { %906 = vmatmul.msk.bf16.vlgmr.msrb.gmra.mxu3 %vm140_vm1, %v284_v52 }
 0x317   :  { %518 = vmatpush.bf16.xpose.msrb.mxu3 %v509_v53 }
 0x31b   :  { %v282_v54 = vpop.f32.mrf.mxu2 }
 0x323   :  { %v388_v55 = vpop.f32.mrf.mxu2 }
 0x324   :  { %v392_v56 = vpack.c.bf16 %v388_v55, %v388_v55 }
 0x326   :  { %910 = vmatmul.msk.bf16.vlgmr.msra.gmra.mxu3 %vm140_vm1, %v392_v56 }
 0x327   :  { %658 = vmatpush.bf16.msra.mxu3 %v289_v29 }
 0x32b   :  { %v390_v57 = vpop.f32.mrf.mxu2 }
 0x336   :  { %914 = vmatmul.msk.bf16.vlgmr.msrb.gmra.mxu3 %vm140_vm1, %v135_v59 }
 0x337   :  { %760 = vmatpush.bf16.msrb.mxu3 %v397_v48 }
 0x366   :  { %v201_v60 = vpop.f32.mrf.mxu0 }
 0x367   :  { %v205_v61 = vpack.c.bf16 %v201_v60, %v201_v60 }
 0x369   :  { %907 = vmatmul.msk.bf16.vlgmr.msra.gmra.mxu0 %vm140_vm1, %v205_v61 }
 0x36a   :  { %562 = vmatpush.bf16.msra.mxu0 %v553_v62 }
 0x36e   :  { %v203_v63 = vpop.f32.mrf.mxu0 }
 0x379   :  { %911 = vmatmul.msk.bf16.vlgmr.msrb.gmra.mxu0 %vm140_vm1, %v414_v0 }
 0x37a   :  { %674 = vmatpush.bf16.msrb.mxu0 %v308_v27 }
 0x399   :  { %v300_v1 = vpop.f32.mrf.mxu3 }
 0x3a1   :  { %v302_v2 = vpop.f32.mrf.mxu3 }
 0x3a9   :  { %v408_v3 = vpop.f32.mrf.mxu3 }
 0x3b1   :  { %v410_v4 = vpop.f32.mrf.mxu3 }
 0x3b9   :  { %v520_v5 = vpop.f32.mrf.mxu3 }
 0x3ba   :  { %v524_v6 = vsel %vm140_vm1, %v520_v5, -inf }
 0x3bb   :  { %525 = vmax.xlane.f32.xlu1 %v524_v6  ;;  %v43_v6 = vld [vmem:[%s1212_s3 + $0x3c] sm:$0xf] }
 0x3c1   :  { %v522_v7 = vpop.f32.mrf.mxu3 }
 0x3c2   :  { %v1165_v7 = vsel %vm188_vm2, %v43_v6, 0 }
 0x3c3   :  { %496 = vmatpush.bf16.msrb.mxu2 %v1165_v7 }
 0x3d4   :  { %577 = vrot.lane.b32.xlu1 %v576_v9, %s997_s1 }
 0x3e6   :  { %v319_v10 = vpop.f32.mrf.mxu0 }
 0x3e7   :  { %v320_v11 = vadd.f32 %v319_v10, %v300_v1 }
 0x3e9   :  { %v1139_v12 = vadd.f32 %v408_v3, %v320_v11 }
 0x3ee   :  { %v321_v13 = vpop.f32.mrf.mxu0 }
 0x3f6   :  { %v432_v14 = vpop.f32.mrf.mxu0 }
 0x3f7   :  { %v436_v15 = vsel %vm140_vm1, %v432_v14, -inf }
 0x3f8   :  { %437 = vmax.xlane.f32.xlu2 %v436_v15 }
 0x3fe   :  { %v434_v16 = vpop.f32.mrf.mxu0 }
 0x42e   :  { %v526_v17 = vpop.xlane.xlu1 %525 }
 0x42f   :  { %v527_v18 = vsub.f32 %v520_v5, %v526_v17 }
 0x431   :  { %v528_v19 = vmul.f32 1.442695, %v527_v18 }
 0x433   :  { %950 = vpow2.f32 %v528_v19 }
 0x439   :  { %v951_v20 = vpop.eup %950 }
 0x43a   :  { %v530_v21 = vsel %vm140_vm1, %v951_v20, 0.0 }
 0x43b   :  { %531 = vadd.xlane.f32.xlu0 %v530_v21 }
 0x446   :  { %v578_v45 = vpop.permute.xlu1 %577 }
 0x447   :  { %v583_v49 = vsel %vm140_vm1, %v578_v45, 0 }
 0x44f   :  { %572 = vrot.lane.b32.xlu0 %v571_v23, %s997_s1 }
 0x457   :  { %767 = vrot.lane.b32.xlu0 %v571_v23, %s998_s2 }
 0x46b   :  { %v438_v24 = vpop.xlane.xlu2 %437 }
 0x46c   :  { %v439_v25 = vsub.f32 %v432_v14, %v438_v24 }
 0x46e   :  { %v440_v26 = vmul.f32 1.442695, %v439_v25  ;;  %v44_v25 = vld [vmem:[%s1212_s3 + $0x40] sm:$0x1]  ;;  %s999_s3 = smov [#allocation2]  }
 0x46f   :  { %s861_s23 = sshll.u32 %s999_s3, 4  ;;  %s862_s23 = int_to_ptr.vmem [resolvable:$true] %s861_s23 }
 0x470   :  { %952 = vpow2.f32 %v440_v26  ;;  %v45_v26 = vunpack.c.l.bf16 %v44_v25 }
 0x476   :  { %v953_v27 = vpop.eup %952 }
 0x477   :  { %v442_v28 = vsel %vm140_vm1, %v953_v27, 0.0 }
 0x478   :  { %443 = vadd.xlane.f32.xlu2 %v442_v28  ;;  %v1179_v28 = vperm.slane %v45_v26, 0 }
 0x490   :  { %461 = vrot.lane.b32.xlu2 %v1088_v42, %s998_s2 }
 0x498   :  { %682 = vrot.lane.b32.xlu2 %v576_v9, %s996_s0 }
 0x4a0   :  { %769 = vrot.lane.b32.xlu2 %v576_v9, %s998_s2 }
 0x4a8   :  { %680 = vrot.lane.b32.xlu2 %v571_v23, %s996_s0  ;;  %v624_v23 = vunpack.c.l.b16 %v1131_v32 }
 0x4aa   :  { %v625_v24 = vpack.c.b16 %v624_v23, %v624_v23 }
 0x4ae   :  { %v532_v29 = vpop.xlane.xlu0 %531 }
 0x4af   :  { %954 = vrcp.f32 %v532_v29  ;;  %v544_v34 = vand.u32 2147483648, %v532_v29  ;;  %v542_v36 = vand.u32 2147483647, %v532_v29  ;;  %vm538_vm3 = vweird.f32 %v532_v29 }
 0x4b1   :  { %v545_v38 = vor.u32 1.1754944e-38, %v544_v34  ;;  %vm543_vm5 = vcmp.eq.f32.partialorder %v542_v36, 8.507059e+37 }
 0x4b5   :  { %v955_v30 = vpop.eup %954 }
 0x4b6   :  { %v534_v31 = vmul.f32 %v955_v30, %v532_v29  ;;  %vm539_vm15 = vweird.f32 %v955_v30 }
 0x4b7   :  { %vm540_vm4 = vmor %vm538_vm3, %vm539_vm15 }
 0x4b8   :  { %v535_v33 = vsub.f32 1.0, %v534_v31 }
 0x4ba   :  { %v536_v35 = vmul.f32 %v955_v30, %v535_v33 }
 0x4bc   :  { %v537_v37 = vadd.f32 %v955_v30, %v536_v35 }
 0x4be   :  { %v541_v42 = vsel %vm540_vm4, %v955_v30, %v537_v37 }
 0x4bf   :  { %v546_v39 = vsel %vm543_vm5, %v545_v38, %v541_v42 }
 0x4c0   :  { %v547_v40 = vmul.f32 %v951_v20, %v546_v39 }
 0x4c1   :  { %v573_v0 = vpop.permute.xlu0 %572 }
 0x4c2   :  { %v548_v41 = vpack.c.bf16 %v547_v40, %v547_v40 }
 0x4c4   :  { %915 = vmatmul.msk.bf16.vlgmr.msra.gmra.mxu0 %vm140_vm1, %v548_v41 }
 0x4c9   :  { %v768_v5 = vpop.permute.xlu0 %767 }
 0x4eb   :  { %v444_v43 = vpop.xlane.xlu2 %443 }
 0x4ec   :  { %956 = vrcp.f32 %v444_v43  ;;  %v456_v51 = vand.u32 2147483648, %v444_v43  ;;  %v454_v53 = vand.u32 2147483647, %v444_v43  ;;  %vm450_vm7 = vweird.f32 %v444_v43 }
 0x4ee   :  { %v457_v55 = vor.u32 1.1754944e-38, %v456_v51  ;;  %vm455_vm9 = vcmp.eq.f32.partialorder %v454_v53, 8.507059e+37 }
 0x4f2   :  { %v957_v44 = vpop.eup %956 }
 0x4f3   :  { %v446_v46 = vmul.f32 %v957_v44, %v444_v43  ;;  %v462_v47 = vpop.permute.xlu2 %461  ;;  %vm451_vm6 = vweird.f32 %v957_v44 }
 0x4f4   :  { %v467_v48 = vsel %vm188_vm2, %v462_v47, 0  ;;  %vm452_vm8 = vmor %vm450_vm7, %vm451_vm6 }
 0x4f5   :  { %v447_v50 = vsub.f32 1.0, %v446_v46  ;;  %476 = vmatpush.bf16.msrb.mxu1 %v467_v48 }
 0x4f7   :  { %v448_v52 = vmul.f32 %v957_v44, %v447_v50 }
 0x4f9   :  { %592 = vmatpush.bf16.xpose.msra.mxu1 %v583_v49  ;;  %v449_v54 = vadd.f32 %v957_v44, %v448_v52 }
 0x4fb   :  { %v453_v56 = vsel %vm452_vm8, %v957_v44, %v449_v54  ;;  %v683_v57 = vpop.permute.xlu2 %682 }
 0x4fc   :  { %v458_v58 = vsel %vm455_vm9, %v457_v55, %v453_v56  ;;  %v688_v61 = vsel %vm140_vm1, %v683_v57, 0 }
 0x4fd   :  { %v459_v59 = vmul.f32 %v953_v27, %v458_v58 }
 0x4ff   :  { %v460_v60 = vpack.c.bf16 %v459_v59, %v459_v59 }
 0x501   :  { %912 = vmatmul.msk.bf16.vlgmr.msrb.gmra.mxu1 %vm140_vm1, %v460_v60 }
 0x502   :  { %697 = vmatpush.bf16.xpose.msrb.mxu1 %v688_v61 }
 0x503   :  { %v770_v62 = vpop.permute.xlu2 %769 }
 0x504   :  { %v775_v63 = vsel %vm140_vm1, %v770_v62, 0 }
 0x505   :  { %784 = vmatpush.bf16.xpose.msra.mxu0 %v775_v63 }
 0x50b   :  { %v681_v1 = vpop.permute.xlu2 %680 }
 0x511   :  { %916 = vmatmul.msk.bf16.vlgmr.msra.gmra.mxu1 %vm140_vm1, %v573_v0 }
 0x521   :  { %920 = vmatmul.msk.bf16.vlgmr.msrb.gmra.mxu1 %vm140_vm1, %v681_v1 }
 0x541   :  { %v564_v2 = vpop.f32.mrf.mxu0 }
 0x542   :  { %v568_v3 = vpack.c.bf16 %v564_v2, %v564_v2 }
 0x544   :  { %919 = vmatmul.msk.bf16.vlgmr.msrb.gmra.mxu0 %vm140_vm1, %v568_v3 }
 0x549   :  { %v566_v4 = vpop.f32.mrf.mxu0 }
 0x554   :  { %923 = vmatmul.msk.bf16.vlgmr.msra.gmra.mxu0 %vm140_vm1, %v768_v5 }
 0x57e   :  { %v478_v8 = vpop.f32.mrf.mxu1 }
 0x57f   :  { %v482_v9 = vpack.c.bf16 %v478_v8, %v478_v8 }
 0x581   :  { %913 = vmatmul.msk.bf16.vlgmr.msrb.gmra.mxu2 %vm140_vm1, %v482_v9 }
 0x586   :  { %v480_v10 = vpop.f32.mrf.mxu1 }
 0x58e   :  { %v594_v11 = vpop.f32.mrf.mxu1 }
 0x58f   :  { %v598_v13 = vsel %vm140_vm1, %v594_v11, -inf }
 0x590   :  { %599 = vmax.xlane.f32.xlu1 %v598_v13 }
 0x596   :  { %v596_v14 = vpop.f32.mrf.mxu1 }
 0x59e   :  { %v699_v15 = vpop.f32.mrf.mxu1 }
 0x59f   :  { %v703_v16 = vsel %vm140_vm1, %v699_v15, -inf }
 0x5a0   :  { %704 = vmax.xlane.f32.xlu2 %v703_v16 }
 0x5a6   :  { %v701_v17 = vpop.f32.mrf.mxu1 }
 0x5c1   :  { %v1171_v18 = vpop.f32.mrf.mxu0 }
 0x5c9   :  { %v678_v19 = vpop.f32.mrf.mxu0 }
 0x5d1   :  { %v786_v20 = vpop.f32.mrf.mxu0 }
 0x5d2   :  { %v790_v21 = vsel %vm140_vm1, %v786_v20, -inf }
 0x5d3   :  { %791 = vmax.xlane.f32.xlu0 %v790_v21 }
 0x5d9   :  { %v788_v22 = vpop.f32.mrf.mxu0 }
 0x5e7   :  { %626 = vrot.lane.b32.xlu0 %v625_v24, %s997_s1 }
 0x603   :  { %v600_v27 = vpop.xlane.xlu1 %599 }
 0x604   :  { %v601_v29 = vsub.f32 %v594_v11, %v600_v27  ;;  %v498_v30 = vpop.f32.mrf.mxu2 }
 0x605   :  { %v502_v31 = vadd.f32 %v498_v30, %v1139_v12 }
 0x606   :  { %v602_v33 = vmul.f32 1.442695, %v601_v29 }
 0x607   :  { %v504_v34 = vadd.f32 %v1179_v28, %v502_v31 }
 0x608   :  { %958 = vpow2.f32 %v602_v33 }
 0x609   :  { %855 = vst.msk [vmem:[#allocation2] sm:$0xff] %vm58_vm0, %v504_v34 }
 0x60c   :  { %v500_v32 = vpop.f32.mrf.mxu2 }
 0x60e   :  { %v959_v35 = vpop.eup %958 }
 0x60f   :  { %v604_v36 = vsel %vm140_vm1, %v959_v35, 0.0 }
 0x610   :  { %605 = vadd.xlane.f32.xlu1 %v604_v36 }
 0x613   :  { %v705_v37 = vpop.xlane.xlu2 %704 }
 0x614   :  { %v706_v38 = vsub.f32 %v699_v15, %v705_v37 }
 0x616   :  { %v707_v42 = vmul.f32 1.442695, %v706_v38 }
 0x618   :  { %960 = vpow2.f32 %v707_v42 }
 0x61e   :  { %v961_v39 = vpop.eup %960 }
 0x61f   :  { %v709_v40 = vsel %vm140_vm1, %v961_v39, 0.0 }
 0x620   :  { %710 = vadd.xlane.f32.xlu2 %v709_v40 }
 0x638   :  { %728 = vrot.lane.b32.xlu2 %v625_v24, %s996_s0 }
 0x646   :  { %v792_v12 = vpop.xlane.xlu0 %791 }
 0x647   :  { %v793_v41 = vsub.f32 %v786_v20, %v792_v12 }
 0x649   :  { %v794_v43 = vmul.f32 1.442695, %v793_v41 }
 0x64b   :  { %962 = vpow2.f32 %v794_v43 }
 0x651   :  { %v1187_v44 = vpop.eup %962 }
 0x652   :  { %v796_v45 = vsel %vm140_vm1, %v1187_v44, 0.0 }
 0x653   :  { %797 = vadd.xlane.f32.xlu1 %v796_v45 }
 0x659   :  { %v627_v46 = vpop.permute.xlu0 %626 }
 0x65a   :  { %v632_v47 = vsel %vm188_vm2, %v627_v46, 0 }
 0x65b   :  { %641 = vmatpush.bf16.msra.mxu2 %v632_v47 }
 0x66c   :  { %815 = vrot.lane.b32.xlu1 %v625_v24, %s998_s2 }
 0x683   :  { %v606_v48 = vpop.xlane.xlu1 %605 }
 0x684   :  { %964 = vrcp.f32 %v606_v48  ;;  %v618_v52 = vand.u32 2147483648, %v606_v48  ;;  %v616_v54 = vand.u32 2147483647, %v606_v48  ;;  %vm612_vm11 = vweird.f32 %v606_v48 }
 0x686   :  { %v619_v56 = vor.u32 1.1754944e-38, %v618_v52  ;;  %vm617_vm13 = vcmp.eq.f32.partialorder %v616_v54, 8.507059e+37 }
 0x68a   :  { %v965_v49 = vpop.eup %964 }
 0x68b   :  { %v608_v50 = vmul.f32 %v965_v49, %v606_v48  ;;  %vm613_vm10 = vweird.f32 %v965_v49 }
 0x68c   :  { %vm614_vm12 = vmor %vm612_vm11, %vm613_vm10 }
 0x68d   :  { %v609_v51 = vsub.f32 1.0, %v608_v50 }
 0x68f   :  { %v610_v53 = vmul.f32 %v965_v49, %v609_v51 }
 0x691   :  { %v611_v55 = vadd.f32 %v965_v49, %v610_v53 }
 0x693   :  { %v615_v57 = vsel %vm614_vm12, %v965_v49, %v611_v55  ;;  %v711_v58 = vpop.xlane.xlu2 %710 }
 0x694   :  { %v620_v59 = vsel %vm617_vm13, %v619_v56, %v615_v57  ;;  %966 = vrcp.f32 %v711_v58  ;;  %v723_v3 = vand.u32 2147483648, %v711_v58  ;;  %v721_v5 = vand.u32 2147483647, %v711_v58 }
 0x695   :  { %v621_v60 = vmul.f32 %v959_v35, %v620_v59  ;;  %vm717_vm15 = vweird.f32 %v711_v58 }
 0x696   :  { %v724_v8 = vor.u32 1.1754944e-38, %v723_v3  ;;  %vm722_vm4 = vcmp.eq.f32.partialorder %v721_v5, 8.507059e+37 }
 0x697   :  { %v622_v61 = vpack.c.bf16 %v621_v60, %v621_v60 }
 0x699   :  { %917 = vmatmul.msk.bf16.vlgmr.msra.gmra.mxu2 %vm140_vm1, %v622_v61 }
 0x69a   :  { %v967_v62 = vpop.eup %966 }
 0x69b   :  { %v713_v63 = vmul.f32 %v967_v62, %v711_v58  ;;  %v729_v0 = vpop.permute.xlu2 %728  ;;  %vm718_vm14 = vweird.f32 %v967_v62 }
 0x69c   :  { %v734_v1 = vsel %vm188_vm2, %v729_v0, 0  ;;  %vm719_vm3 = vmor %vm717_vm15, %vm718_vm14 }
 0x69d   :  { %v714_v2 = vsub.f32 1.0, %v713_v63  ;;  %743 = vmatpush.bf16.msrb.mxu2 %v734_v1 }
 0x69f   :  { %v715_v4 = vmul.f32 %v967_v62, %v714_v2 }
 0x6a1   :  { %847 = vmatpush.bf16.msra.mxu2 %v1165_v7  ;;  %v716_v6 = vadd.f32 %v967_v62, %v715_v4 }
 0x6a3   :  { %v720_v9 = vsel %vm719_vm3, %v967_v62, %v716_v6 }
 0x6a4   :  { %v725_v10 = vsel %vm722_vm4, %v724_v8, %v720_v9 }
 0x6a5   :  { %v726_v11 = vmul.f32 %v961_v39, %v725_v10 }
 0x6a7   :  { %v727_v13 = vpack.c.bf16 %v726_v11, %v726_v11 }
 0x6a9   :  { %921 = vmatmul.msk.bf16.vlgmr.msrb.gmra.mxu2 %vm140_vm1, %v727_v13 }
 0x6c6   :  { %v798_v14 = vpop.xlane.xlu1 %797 }
 0x6c7   :  { %968 = vrcp.f32 %v798_v14  ;;  %v810_v20 = vand.u32 2147483648, %v798_v14  ;;  %vm804_vm6 = vweird.f32 %v798_v14  ;;  %v808_v21 = vand.u32 2147483647, %v798_v14 }
 0x6c9   :  { %v811_v23 = vor.u32 1.1754944e-38, %v810_v20  ;;  %vm809_vm8 = vcmp.eq.f32.partialorder %v808_v21, 8.507059e+37 }
 0x6cd   :  { %v969_v15 = vpop.eup %968 }
 0x6ce   :  { %v800_v16 = vmul.f32 %v969_v15, %v798_v14  ;;  %vm805_vm5 = vweird.f32 %v969_v15 }
 0x6cf   :  { %vm806_vm7 = vmor %vm804_vm6, %vm805_vm5 }
 0x6d0   :  { %v801_v17 = vsub.f32 1.0, %v800_v16 }
 0x6d2   :  { %v802_v7 = vmul.f32 %v969_v15, %v801_v17 }
 0x6d4   :  { %v803_v19 = vadd.f32 %v969_v15, %v802_v7 }
 0x6d6   :  { %v807_v22 = vsel %vm806_vm7, %v969_v15, %v803_v19 }
 0x6d7   :  { %v812_v24 = vsel %vm809_vm8, %v811_v23, %v807_v22 }
 0x6d8   :  { %v813_v25 = vmul.f32 %v1187_v44, %v812_v24 }
 0x6da   :  { %v814_v29 = vpack.c.bf16 %v813_v25, %v813_v25 }
 0x6de   :  { %v816_v26 = vpop.permute.xlu1 %815 }
 0x6df   :  { %v821_v27 = vsel %vm188_vm2, %v816_v26, 0 }
 0x6e0   :  { %830 = vmatpush.bf16.msra.mxu1 %v821_v27 }
 0x6e3   :  { %924 = vmatmul.msk.bf16.vlgmr.msra.gmra.mxu1 %vm140_vm1, %v814_v29 }
 0x71c   :  { %v643_v30 = vpop.f32.mrf.mxu2 }
 0x71d   :  { %v647_v31 = vpack.c.bf16 %v643_v30, %v643_v30 }
 0x71f   :  { %918 = vmatmul.msk.bf16.vlgmr.msra.gmra.mxu3 %vm140_vm1, %v647_v31 }
 0x724   :  { %v645_v33 = vpop.f32.mrf.mxu2 }
 0x72c   :  { %v745_v34 = vpop.f32.mrf.mxu2 }
 0x72d   :  { %v749_v32 = vpack.c.bf16 %v745_v34, %v745_v34 }
 0x72f   :  { %922 = vmatmul.msk.bf16.vlgmr.msrb.gmra.mxu3 %vm140_vm1, %v749_v32 }
 0x734   :  { %v747_v35 = vpop.f32.mrf.mxu2 }
 0x760   :  { %v832_v36 = vpop.f32.mrf.mxu1 }
 0x761   :  { %v836_v37 = vpack.c.bf16 %v832_v36, %v832_v36 }
 0x763   :  { %925 = vmatmul.msk.bf16.vlgmr.msra.gmra.mxu2 %vm140_vm1, %v836_v37 }
 0x768   :  { %v834_v38 = vpop.f32.mrf.mxu1 }
 0x7a2   :  { %v660_v42 = vpop.f32.mrf.mxu3 }
 0x7a3   :  { %v677_v41 = vadd.f32 %v1171_v18, %v660_v42 }
 0x7aa   :  { %v662_v39 = vpop.f32.mrf.mxu3 }
 0x7b2   :  { %v762_v40 = vpop.f32.mrf.mxu3 }
 0x7b3   :  { %v766_v43 = vadd.f32 %v762_v40, %v677_v41 }
 0x7ba   :  { %v764_v12 = vpop.f32.mrf.mxu3 }
 0x7e6   :  { %v849_v44 = vpop.f32.mrf.mxu2 }
 0x7e7   :  { %v853_v45 = vadd.f32 %v849_v44, %v766_v43 }
 0x7e9   :  { %v854_v46 = vadd.f32 %v853_v45, %v1179_v28 }
 0x7eb   :  { %856 = vst.msk [vmem:[#allocation2 + $0x8] sm:$0xff] %vm58_vm0, %v854_v46 }
 0x7ec   :  { %869 = dma.vmem_to_hbm [thread:$0]  %s862_s23, 256, %s864_s26, [#allocation3], %s1000_s27, %s1000_s27, %s1001_s28  }
 0x7ee   :  { %v851_v47 = vpop.f32.mrf.mxu2 }
 0x7ef   :  { %994 = dma.done.wait [#allocation3], 256  }
 0x7f0   :  { %995 = vsyncadd [#allocation3], 4294967040 }
 0x7f1   :  { %874 = vsyncpa [#allocation3], 1 }

</bundles_post_ra>
